<compile_context>
chip_gen: v5e
topology: v5e:2x2
jax: 0.10.0
libtpu: 0.0.40
codegen_flags: <defaults>
</compile_context>

<pallas_src>
import functools
import math

import jax
import jax.numpy as jnp
from jax import lax
from jax.experimental import pallas as pl
from jax.experimental.pallas import tpu as pltpu


LANE = 128  # TPU lane width; feature dims are padded up to multiples of this.


def _round_up(x: int, m: int) -> int:
    return ((x + m - 1) // m) * m


# ----------------------------------------------------------------------------
# Pallas kernel: fused (one-hot -> phi -> sum over positions -> MLP head).
# refs = (w_phi, b_phi, w_h0, b_h0, ..., w_last_row, b_last, out_ref)
# ----------------------------------------------------------------------------
def _deepset_kernel(x_ref, *refs, n, num_hidden, c_pad):
    out_ref = refs[-1]
    prefs = refs[:-1]

    tb = x_ref.shape[0]
    x = x_ref[...]                                            # (TB, n) int32

    # counts[b, c] = #{s : x[b, s] == c}, built with a lane-iota compare.
    # (out-of-range indices would simply contribute nothing, like jax one_hot)
    cls = lax.broadcasted_iota(jnp.int32, (tb, c_pad), 1)     # (TB, C_pad)
    counts = jnp.zeros((tb, c_pad), jnp.float32)
    for s in range(n):                                        # n is small & static
        counts = counts + (x[:, s : s + 1] == cls).astype(jnp.float32)

    # phi + sum over positions:  u = counts @ W_phi^T + n * b_phi
    # (phi bias is pre-scaled by n in the wrapper).
    w_phi = prefs[0][...]                                     # (C_pad, P_pad) bf16
    b_phi = prefs[1][...]                                     # (1, P_pad)     f32
    h = jnp.dot(counts.astype(jnp.bfloat16), w_phi,
                preferred_element_type=jnp.float32) + b_phi

    # Hidden layers: Linear + ReLU (bf16 matmul inputs, f32 accumulate/elementwise).
    for i in range(num_hidden):
        w = prefs[2 + 2 * i][...]                             # (in_pad, out_pad) bf16
        b = prefs[3 + 2 * i][...]                             # (1, out_pad)      f32
        h = jnp.dot(h.astype(jnp.bfloat16), w,
                    preferred_element_type=jnp.float32) + b
        h = jnp.maximum(h, 0.0)

    # Final (hidden -> 1) layer as a VPU multiply + lane reduction
    # (avoids an N=1 MXU pass and the masked-store path it would cause).
    w_last = prefs[2 + 2 * num_hidden][...]                   # (1, H_pad) f32
    b_last = prefs[3 + 2 * num_hidden][...]                   # (1, 1)     f32
    out = jnp.sum(h * w_last, axis=-1, keepdims=True) + b_last
    out_ref[...] = out.astype(out_ref.dtype)


# ----------------------------------------------------------------------------
# Wrapper: pads feature dims to 128 lanes, batch to the tile size, launches the
# kernel on a parallel batch grid.
# ----------------------------------------------------------------------------
def deepset_mlp_forward(x_int, params, num_classes, *, batch_tile=8):
    """x_int: (B, n) int32 class indices.  params: dict from init_params."""
    phi_w, phi_b = params["phi"]            # (C, P), (P,)
    hidden = params["hidden"]               # list of ((in, out), (out,))
    last_w, last_b = params["last"]         # (H_last, 1), (1,)

    B, n = x_int.shape
    C = num_classes
    assert phi_w.shape[0] == C

    c_pad = _round_up(C, LANE)
    p_pad = _round_up(phi_w.shape[1], LANE)

    def pad2(a, rows, cols, dtype):
        a = jnp.asarray(a, jnp.float32)
        return jnp.pad(a, ((0, rows - a.shape[0]), (0, cols - a.shape[1]))).astype(dtype)

    # Zero-padding keeps the math exact: padded classes have zero counts and
    # padded feature columns carry zero weights + zero bias through every layer.
    flat = [
        pad2(phi_w, c_pad, p_pad, jnp.bfloat16),
        pad2((float(n) * phi_b)[None, :], 1, p_pad, jnp.float32),
    ]
    flops_per_row = 2 * c_pad * p_pad
    prev_pad = p_pad
    for w, b in hidden:
        o_pad = _round_up(w.shape[1], LANE)
        flat.append(pad2(w, prev_pad, o_pad, jnp.bfloat16))
        flat.append(pad2(b[None, :], 1, o_pad, jnp.float32))
        flops_per_row += 2 * prev_pad * o_pad
        prev_pad = o_pad
    flat.append(pad2(last_w.T, 1, prev_pad, jnp.float32))     # (1, H_pad) row vector
    flat.append(jnp.asarray(last_b, jnp.float32).reshape(1, 1))
    flops_per_row += 2 * prev_pad

    # Batch tiling: pad B up to a multiple of the tile, slice afterwards.
    b_pad = _round_up(B, batch_tile)
    x_pad = jnp.pad(jnp.asarray(x_int, jnp.int32), ((0, b_pad - B), (0, 0)))
    grid = (b_pad // batch_tile,)

    in_specs = [pl.BlockSpec((batch_tile, n), lambda i: (i, 0))]
    # Weights/biases: full-array blocks with constant index_map -> VMEM-resident
    # across all batch tiles (no re-DMA per grid step).
    in_specs += [pl.BlockSpec(p.shape, lambda i: (0, 0)) for p in flat]
    out_spec = pl.BlockSpec((batch_tile, 1), lambda i: (i, 0))

    bytes_accessed = int(x_pad.size) * 4 + int(b_pad) * 4
    bytes_accessed += sum(int(p.size) * p.dtype.itemsize for p in flat)

    kernel = functools.partial(
        _deepset_kernel, n=n, num_hidden=len(hidden), c_pad=c_pad
    )

    # NOTE: at these sizes the resident weights + one batch tile are far below the
    # scoped-VMEM default on every generation (incl. v7x's smaller 64 MiB VMEM),
    # so no explicit vmem_limit_bytes is needed; revisit if feature dims grow large.
    out = pl.pallas_call(
        kernel,
        out_shape=jax.ShapeDtypeStruct((b_pad, 1), jnp.float32),
        grid=grid,
        in_specs=in_specs,
        out_specs=out_spec,
        compiler_params=pltpu.CompilerParams(
            dimension_semantics=("parallel",),
        ),
        cost_estimate=pl.CostEstimate(
            flops=int(b_pad) * int(flops_per_row),
            transcendentals=0,
            bytes_accessed=int(bytes_accessed),
        ),
    )(x_pad, *flat)
    return out[:B]


# ----------------------------------------------------------------------------
# Deterministic parameter init (PyTorch nn.Linear-style uniform bounds).
# Weights are stored (in_features, out_features).
# ----------------------------------------------------------------------------
def init_params(key, num_classes, phi_dim, mlp_hidden):
    def linear(k, fan_in, fan_out):
        bound = 1.0 / math.sqrt(fan_in)
        kw, kb = jax.random.split(k)
        w = jax.random.uniform(kw, (fan_in, fan_out), jnp.float32, -bound, bound)
        b = jax.random.uniform(kb, (fan_out,), jnp.float32, -bound, bound)
        return w, b

    keys = jax.random.split(key, len(mlp_hidden) + 2)
    phi = linear(keys[0], num_classes, phi_dim)
    hidden = []
    in_f = phi_dim
    for i, h in enumerate(mlp_hidden):
        hidden.append(linear(keys[1 + i], in_f, h))
        in_f = h
    last = linear(keys[-1], in_f, 1)
    return {"phi": phi, "hidden": hidden, "last": last}


def reference_forward_f32(x_int, params):
    """Pure-f32 reference mirroring the PyTorch module structure exactly."""
    phi_w, phi_b = params["phi"]
    oh = jax.nn.one_hot(x_int, phi_w.shape[0], dtype=jnp.float32)   # (B, n, C)
    h = jnp.einsum("bnc,cp->bnp", oh, phi_w) + phi_b                # phi per position
    u = h.sum(axis=1)                                               # DeepSets aggregate
    for w, b in params["hidden"]:
        u = jnp.maximum(u @ w + b, 0.0)
    w_last, b_last = params["last"]
    return u @ w_last + b_last


def reference_forward_mixed(x_int, params, n):
    """Mirrors the kernel's numerics (bf16 matmul inputs, f32 accumulation)."""
    rnd = lambda a: a.astype(jnp.bfloat16).astype(jnp.float32)
    phi_w, phi_b = params["phi"]
    oh = jax.nn.one_hot(x_int, phi_w.shape[0], dtype=jnp.float32)
    counts = oh.sum(axis=1)                                         # (B, C)
    u = counts @ rnd(phi_w) + float(n) * phi_b
    for w, b in params["hidden"]:
        u = jnp.maximum(rnd(u) @ rnd(w) + b, 0.0)
    w_last, b_last = params["last"]
    return u @ w_last + b_last


if __name__ == "__main__":
    # Small shapes consistent with the module (num_classes == n, as for permutations).
    B, n = 16, 8
    num_classes = 8
    phi_dim = 32
    mlp_hidden = [32, 16]

    key = jax.random.PRNGKey(0)
    k_x, k_p = jax.random.split(key)
    x = jax.random.randint(k_x, (B, n), 0, num_classes, dtype=jnp.int32)
    params = init_params(k_p, num_classes, phi_dim, mlp_hidden)

    out = deepset_mlp_forward(x, params, num_classes)
    out = jax.block_until_ready(out)
    assert out.shape == (B, 1)

    ref_mixed = reference_forward_mixed(x, params, n)
    ref_f32 = reference_forward_f32(x, params)
    assert jnp.allclose(out, ref_mixed, atol=2e-3, rtol=2e-3), \
        "mismatch vs mixed-precision (bf16-in / f32-acc) reference"
    assert jnp.allclose(out, ref_f32, atol=5e-2, rtol=5e-2), \
        "mismatch vs pure-f32 module reference"

    print("KERNEL_OK")
</pallas_src>

<mosaic_0001>
module attributes {stable_mosaic.version = 11 : i64} {
  func.func @_deepset_kernel(%arg0: i32, %arg1: memref<8x8xi32, #tpu.memory_space<vmem>>, %arg2: memref<128x128xbf16, #tpu.memory_space<vmem>>, %arg3: memref<1x128xf32, #tpu.memory_space<vmem>>, %arg4: memref<128x128xbf16, #tpu.memory_space<vmem>>, %arg5: memref<1x128xf32, #tpu.memory_space<vmem>>, %arg6: memref<128x128xbf16, #tpu.memory_space<vmem>>, %arg7: memref<1x128xf32, #tpu.memory_space<vmem>>, %arg8: memref<1x128xf32, #tpu.memory_space<vmem>>, %arg9: memref<1x1xf32, #tpu.memory_space<vmem>>, %arg10: memref<8x1xf32, #tpu.memory_space<vmem>>) attributes {dimension_semantics = [#tpu.dimension_semantics<parallel>], iteration_bounds = array<i64: 2>, scalar_prefetch = 0 : i64, scratch_operands = 0 : i64, tpu.core_type = #tpu.core_type<tc>, window_params = [{transform_indices = @transform_0, window_bounds = array<i64: 8, 8>}, {pipeline_mode = #tpu.pipeline_mode<synchronous>, transform_indices = @transform_1, window_bounds = array<i64: 128, 128>}, {pipeline_mode = #tpu.pipeline_mode<synchronous>, transform_indices = @transform_2, window_bounds = array<i64: 1, 128>}, {pipeline_mode = #tpu.pipeline_mode<synchronous>, transform_indices = @transform_3, window_bounds = array<i64: 128, 128>}, {pipeline_mode = #tpu.pipeline_mode<synchronous>, transform_indices = @transform_4, window_bounds = array<i64: 1, 128>}, {pipeline_mode = #tpu.pipeline_mode<synchronous>, transform_indices = @transform_5, window_bounds = array<i64: 128, 128>}, {pipeline_mode = #tpu.pipeline_mode<synchronous>, transform_indices = @transform_6, window_bounds = array<i64: 1, 128>}, {pipeline_mode = #tpu.pipeline_mode<synchronous>, transform_indices = @transform_7, window_bounds = array<i64: 1, 128>}, {pipeline_mode = #tpu.pipeline_mode<synchronous>, transform_indices = @transform_8, window_bounds = array<i64: 1, 1>}, {transform_indices = @transform_9, window_bounds = array<i64: 8, 1>}]} {
    %c0 = arith.constant 0 : index
    %c0_0 = arith.constant 0 : index
    %0 = vector.load %arg1[%c0, %c0_0] : memref<8x8xi32, #tpu.memory_space<vmem>>, vector<8x8xi32>
    %1 = tpu.iota {dimensions = array<i32: 1>} : vector<8x128xi32>
    %cst = arith.constant 0.000000e+00 : f32
    %2 = vector.broadcast %cst : f32 to vector<8x128xf32>
    %3 = vector.extract_strided_slice %0 {offsets = [0, 0], sizes = [8, 1], strides = [1, 1]} : vector<8x8xi32> to vector<8x1xi32>
    %4 = vector.broadcast %3 : vector<8x1xi32> to vector<8x128xi32>
    %5 = arith.cmpi eq, %4, %1 : vector<8x128xi32>
    %6 = arith.extui %5 : vector<8x128xi1> to vector<8x128xi32>
    %7 = arith.sitofp %6 : vector<8x128xi32> to vector<8x128xf32>
    %8 = arith.addf %2, %7 : vector<8x128xf32>
    %9 = vector.extract_strided_slice %0 {offsets = [0, 1], sizes = [8, 1], strides = [1, 1]} : vector<8x8xi32> to vector<8x1xi32>
    %10 = vector.broadcast %9 : vector<8x1xi32> to vector<8x128xi32>
    %11 = arith.cmpi eq, %10, %1 : vector<8x128xi32>
    %12 = arith.extui %11 : vector<8x128xi1> to vector<8x128xi32>
    %13 = arith.sitofp %12 : vector<8x128xi32> to vector<8x128xf32>
    %14 = arith.addf %8, %13 : vector<8x128xf32>
    %15 = vector.extract_strided_slice %0 {offsets = [0, 2], sizes = [8, 1], strides = [1, 1]} : vector<8x8xi32> to vector<8x1xi32>
    %16 = vector.broadcast %15 : vector<8x1xi32> to vector<8x128xi32>
    %17 = arith.cmpi eq, %16, %1 : vector<8x128xi32>
    %18 = arith.extui %17 : vector<8x128xi1> to vector<8x128xi32>
    %19 = arith.sitofp %18 : vector<8x128xi32> to vector<8x128xf32>
    %20 = arith.addf %14, %19 : vector<8x128xf32>
    %21 = vector.extract_strided_slice %0 {offsets = [0, 3], sizes = [8, 1], strides = [1, 1]} : vector<8x8xi32> to vector<8x1xi32>
    %22 = vector.broadcast %21 : vector<8x1xi32> to vector<8x128xi32>
    %23 = arith.cmpi eq, %22, %1 : vector<8x128xi32>
    %24 = arith.extui %23 : vector<8x128xi1> to vector<8x128xi32>
    %25 = arith.sitofp %24 : vector<8x128xi32> to vector<8x128xf32>
    %26 = arith.addf %20, %25 : vector<8x128xf32>
    %27 = vector.extract_strided_slice %0 {offsets = [0, 4], sizes = [8, 1], strides = [1, 1]} : vector<8x8xi32> to vector<8x1xi32>
    %28 = vector.broadcast %27 : vector<8x1xi32> to vector<8x128xi32>
    %29 = arith.cmpi eq, %28, %1 : vector<8x128xi32>
    %30 = arith.extui %29 : vector<8x128xi1> to vector<8x128xi32>
    %31 = arith.sitofp %30 : vector<8x128xi32> to vector<8x128xf32>
    %32 = arith.addf %26, %31 : vector<8x128xf32>
    %33 = vector.extract_strided_slice %0 {offsets = [0, 5], sizes = [8, 1], strides = [1, 1]} : vector<8x8xi32> to vector<8x1xi32>
    %34 = vector.broadcast %33 : vector<8x1xi32> to vector<8x128xi32>
    %35 = arith.cmpi eq, %34, %1 : vector<8x128xi32>
    %36 = arith.extui %35 : vector<8x128xi1> to vector<8x128xi32>
    %37 = arith.sitofp %36 : vector<8x128xi32> to vector<8x128xf32>
    %38 = arith.addf %32, %37 : vector<8x128xf32>
    %39 = vector.extract_strided_slice %0 {offsets = [0, 6], sizes = [8, 1], strides = [1, 1]} : vector<8x8xi32> to vector<8x1xi32>
    %40 = vector.broadcast %39 : vector<8x1xi32> to vector<8x128xi32>
    %41 = arith.cmpi eq, %40, %1 : vector<8x128xi32>
    %42 = arith.extui %41 : vector<8x128xi1> to vector<8x128xi32>
    %43 = arith.sitofp %42 : vector<8x128xi32> to vector<8x128xf32>
    %44 = arith.addf %38, %43 : vector<8x128xf32>
    %45 = vector.extract_strided_slice %0 {offsets = [0, 7], sizes = [8, 1], strides = [1, 1]} : vector<8x8xi32> to vector<8x1xi32>
    %46 = vector.broadcast %45 : vector<8x1xi32> to vector<8x128xi32>
    %47 = arith.cmpi eq, %46, %1 : vector<8x128xi32>
    %48 = arith.extui %47 : vector<8x128xi1> to vector<8x128xi32>
    %49 = arith.sitofp %48 : vector<8x128xi32> to vector<8x128xf32>
    %50 = arith.addf %44, %49 : vector<8x128xf32>
    %c0_1 = arith.constant 0 : index
    %c0_2 = arith.constant 0 : index
    %51 = vector.load %arg2[%c0_1, %c0_2] : memref<128x128xbf16, #tpu.memory_space<vmem>>, vector<128x128xbf16>
    %c0_3 = arith.constant 0 : index
    %c0_4 = arith.constant 0 : index
    %52 = vector.load %arg3[%c0_3, %c0_4] : memref<1x128xf32, #tpu.memory_space<vmem>>, vector<1x128xf32>
    %53 = arith.truncf %50 : vector<8x128xf32> to vector<8x128xbf16>
    %cst_5 = arith.constant dense<0.000000e+00> : vector<8x128xf32>
    %54 = tpu.matmul %53, %51, %cst_5 {dimension_numbers = #tpu.dot_dimension_numbers<[1], [0], [0], [1], [0, 0, 1, 1], [], []>} : vector<8x128xbf16>, vector<128x128xbf16>, vector<8x128xf32> -> vector<8x128xf32>
    %55 = vector.broadcast %52 : vector<1x128xf32> to vector<8x128xf32>
    %56 = arith.addf %54, %55 : vector<8x128xf32>
    %c0_6 = arith.constant 0 : index
    %c0_7 = arith.constant 0 : index
    %57 = vector.load %arg4[%c0_6, %c0_7] : memref<128x128xbf16, #tpu.memory_space<vmem>>, vector<128x128xbf16>
    %c0_8 = arith.constant 0 : index
    %c0_9 = arith.constant 0 : index
    %58 = vector.load %arg5[%c0_8, %c0_9] : memref<1x128xf32, #tpu.memory_space<vmem>>, vector<1x128xf32>
    %59 = arith.truncf %56 : vector<8x128xf32> to vector<8x128xbf16>
    %cst_10 = arith.constant dense<0.000000e+00> : vector<8x128xf32>
    %60 = tpu.matmul %59, %57, %cst_10 {dimension_numbers = #tpu.dot_dimension_numbers<[1], [0], [0], [1], [0, 0, 1, 1], [], []>} : vector<8x128xbf16>, vector<128x128xbf16>, vector<8x128xf32> -> vector<8x128xf32>
    %61 = vector.broadcast %58 : vector<1x128xf32> to vector<8x128xf32>
    %62 = arith.addf %60, %61 : vector<8x128xf32>
    %cst_11 = arith.constant 0.000000e+00 : f32
    %63 = vector.broadcast %cst_11 : f32 to vector<8x128xf32>
    %64 = arith.maximumf %62, %63 : vector<8x128xf32>
    %c0_12 = arith.constant 0 : index
    %c0_13 = arith.constant 0 : index
    %65 = vector.load %arg6[%c0_12, %c0_13] : memref<128x128xbf16, #tpu.memory_space<vmem>>, vector<128x128xbf16>
    %c0_14 = arith.constant 0 : index
    %c0_15 = arith.constant 0 : index
    %66 = vector.load %arg7[%c0_14, %c0_15] : memref<1x128xf32, #tpu.memory_space<vmem>>, vector<1x128xf32>
    %67 = arith.truncf %64 : vector<8x128xf32> to vector<8x128xbf16>
    %cst_16 = arith.constant dense<0.000000e+00> : vector<8x128xf32>
    %68 = tpu.matmul %67, %65, %cst_16 {dimension_numbers = #tpu.dot_dimension_numbers<[1], [0], [0], [1], [0, 0, 1, 1], [], []>} : vector<8x128xbf16>, vector<128x128xbf16>, vector<8x128xf32> -> vector<8x128xf32>
    %69 = vector.broadcast %66 : vector<1x128xf32> to vector<8x128xf32>
    %70 = arith.addf %68, %69 : vector<8x128xf32>
    %cst_17 = arith.constant 0.000000e+00 : f32
    %71 = vector.broadcast %cst_17 : f32 to vector<8x128xf32>
    %72 = arith.maximumf %70, %71 : vector<8x128xf32>
    %c0_18 = arith.constant 0 : index
    %c0_19 = arith.constant 0 : index
    %73 = vector.load %arg8[%c0_18, %c0_19] : memref<1x128xf32, #tpu.memory_space<vmem>>, vector<1x128xf32>
    %c0_20 = arith.constant 0 : index
    %c0_21 = arith.constant 0 : index
    %74 = vector.load %arg9[%c0_20, %c0_21] : memref<1x1xf32, #tpu.memory_space<vmem>>, vector<1x1xf32>
    %75 = vector.broadcast %73 : vector<1x128xf32> to vector<8x128xf32>
    %76 = arith.mulf %72, %75 : vector<8x128xf32>
    %cst_22 = arith.constant dense<0.000000e+00> : vector<8xf32>
    %77 = vector.multi_reduction <add>, %76, %cst_22 [1] : vector<8x128xf32> to vector<8xf32>
    %78 = vector.shape_cast %77 : vector<8xf32> to vector<8x1xf32>
    %79 = vector.broadcast %74 : vector<1x1xf32> to vector<8x1xf32>
    %80 = arith.addf %78, %79 : vector<8x1xf32>
    %c0_23 = arith.constant 0 : index
    %c0_24 = arith.constant 0 : index
    %81 = vector.load %arg10[%c0_23, %c0_24] : memref<8x1xf32, #tpu.memory_space<vmem>>, vector<8x1xf32>
    tpu.vector_store %arg10[%c0_23, %c0_24], %80 {strides = array<i32>} : memref<8x1xf32, #tpu.memory_space<vmem>>, vector<8x1xf32>,
    return
  }
  func.func @transform_0(%arg0: i32) -> (i32, i32) {
    %c0_i32 = arith.constant 0 : i32
    %c0_i32_0 = arith.constant 0 : i32
    return %arg0, %c0_i32 : i32, i32
  }
  func.func @transform_1(%arg0: i32) -> (i32, i32) {
    %c0_i32 = arith.constant 0 : i32
    %c0_i32_0 = arith.constant 0 : i32
    %c0_i32_1 = arith.constant 0 : i32
    return %c0_i32, %c0_i32_0 : i32, i32
  }
  func.func @transform_2(%arg0: i32) -> (i32, i32) {
    %c0_i32 = arith.constant 0 : i32
    %c0_i32_0 = arith.constant 0 : i32
    %c0_i32_1 = arith.constant 0 : i32
    return %c0_i32, %c0_i32_0 : i32, i32
  }
  func.func @transform_3(%arg0: i32) -> (i32, i32) {
    %c0_i32 = arith.constant 0 : i32
    %c0_i32_0 = arith.constant 0 : i32
    %c0_i32_1 = arith.constant 0 : i32
    return %c0_i32, %c0_i32_0 : i32, i32
  }
  func.func @transform_4(%arg0: i32) -> (i32, i32) {
    %c0_i32 = arith.constant 0 : i32
    %c0_i32_0 = arith.constant 0 : i32
    %c0_i32_1 = arith.constant 0 : i32
    return %c0_i32, %c0_i32_0 : i32, i32
  }
  func.func @transform_5(%arg0: i32) -> (i32, i32) {
    %c0_i32 = arith.constant 0 : i32
    %c0_i32_0 = arith.constant 0 : i32
    %c0_i32_1 = arith.constant 0 : i32
    return %c0_i32, %c0_i32_0 : i32, i32
  }
  func.func @transform_6(%arg0: i32) -> (i32, i32) {
    %c0_i32 = arith.constant 0 : i32
    %c0_i32_0 = arith.constant 0 : i32
    %c0_i32_1 = arith.constant 0 : i32
    return %c0_i32, %c0_i32_0 : i32, i32
  }
  func.func @transform_7(%arg0: i32) -> (i32, i32) {
    %c0_i32 = arith.constant 0 : i32
    %c0_i32_0 = arith.constant 0 : i32
    %c0_i32_1 = arith.constant 0 : i32
    return %c0_i32, %c0_i32_0 : i32, i32
  }
  func.func @transform_8(%arg0: i32) -> (i32, i32) {
    %c0_i32 = arith.constant 0 : i32
    %c0_i32_0 = arith.constant 0 : i32
    %c0_i32_1 = arith.constant 0 : i32
    return %c0_i32, %c0_i32_0 : i32, i32
  }
  func.func @transform_9(%arg0: i32) -> (i32, i32) {
    %c0_i32 = arith.constant 0 : i32
    %c0_i32_0 = arith.constant 0 : i32
    return %arg0, %c0_i32 : i32, i32
  }
}

</mosaic_0001>

<bundles_post_ra>
// kernel: tpu_custom_call.1
= control target key start
LH: loop header
LB: loop body
LE: loop exit
PB: predicated region body
PF: predicated region fallthrough
CT: control target
= control target key end

     0   :  { %s1233_s0 = inlined_call_operand.vmem [shape: s32[16,8], index: 0, kind: input, shape index: {}]   ;;  %s1234_s1 = inlined_call_operand.hbm [shape: bf16[128,128], index: 1, kind: input, shape index: {}]   ;;  %s1235_s2 = inlined_call_operand.vmem [shape: f32[1,128], index: 2, kind: input, shape index: {}]   ;;  %s1236_s3 = inlined_call_operand.hbm [shape: bf16[128,128], index: 3, kind: input, shape index: {}]   ;;  %s1237_s4 = inlined_call_operand.vmem [shape: f32[1,128], index: 4, kind: input, shape index: {}]   ;;  %s1238_s5 = inlined_call_operand.hbm [shape: bf16[128,128], index: 5, kind: input, shape index: {}]   ;;  %s1239_s6 = inlined_call_operand.vmem [shape: f32[1,128], index: 6, kind: input, shape index: {}]   ;;  %s1240_s7 = inlined_call_operand.vmem [shape: f32[1,128], index: 7, kind: input, shape index: {}]   ;;  %s1241_s8 = inlined_call_operand.<no memory space> [shape: f32[1,1], index: 8, kind: input, shape index: {}]   ;;  %s1242_s9 = inlined_call_operand.vmem [shape: f32[16,1], index: 9, kind: output, shape index: {}]  }
   0x1   :  { %v14_v0 = vstv %s1241_s8 }
   0x2   :  { %15 = vst [vmem:[#allocation2] sm:$0x1] %v14_v0 }
   0x3   :  { %16 = vsyncpa [#allocation4], 0 }
   0x4   :  { %17 = vsyncpa [#allocation6], 0  ;;  %s1165_s11 = smov 0  }
   0x5 LB: > { %s1171_s12 = sadd.s32 4294967295, %s1096_s11   ;;  %p787_p0 = scmp.ge.s32.totalorder %s1096_s11, 1  ;;  %s1096_s11 = sphi %s1165_s11, %s23_s11  }
   0x6   : > { %p248_p1 = scmp.lt.s32.totalorder %s1096_s11, 3  ;;  %p950_p2 = scmp.eq.s32.totalorder %s1171_s12, 0 }
   0x7   : > { %s276_s14 = sshll.u32 %s1236_s3, 4  ;;  %s259_s18 = sshll.u32 %s1234_s1, 4  ;;  %s277_s14 = int_to_ptr.hbm [resolvable:$true] %s276_s14  ;;  %s260_s18 = int_to_ptr.hbm [resolvable:$true] %s259_s18 }
   0x8   : > { %p1179_p3 = pnand %p787_p0, %p248_p1  ;;  %s1098_s19 = smov [#allocation5]  }
   0x9   : > { %s278_s20 = sshll.u32 %s1098_s19, 4  ;;  %s1099_s21 = smov [#allocation3]   ;;  %s279_s20 = int_to_ptr.vmem [resolvable:$true] %s278_s20 }
   0xa   : > { %p940_p4 = pneg %p1179_p3  ;;  %s261_s22 = sshll.u32 %s1099_s21, 4  ;;  %s262_s22 = int_to_ptr.vmem [resolvable:$true] %s261_s22 }
   0xb   : > { %s293_s25 = sshll.u32 %s1238_s5, 4  ;;  %s1100_s26 = smov 64   ;;  %s294_s25 = int_to_ptr.hbm [resolvable:$true] %s293_s25 }
   0xc   : > { %p941_p5 = pnand %p950_p2, %p940_p4  ;;  %s1101_s27 = smov 4  }
   0xd   : > { %s1102_s28 = smov [#allocation7]   ;;  %327 = sbr.rel (%p1179_p3) target bundleno = 688 (0x2b0), region = 56 }
   0xe   : > { %946 = dma.hbm_to_vmem [thread:$0]  (!%p941_p5), %s277_s14, 1024, %s279_s20, [#allocation6], %s1100_s26, %s1100_s26, %s1101_s27  }
   0xf   : > { %943 = dma.hbm_to_vmem [thread:$0]  (!%p941_p5), %s260_s18, 1024, %s262_s22, [#allocation4], %s1100_s26, %s1100_s26, %s1101_s27  }
  0x10   : > { %s295_s29 = sshll.u32 %s1102_s28, 4  ;;  %s296_s29 = int_to_ptr.vmem [resolvable:$true] %s295_s29 }
  0x11   : > { %949 = dma.hbm_to_vmem [thread:$0]  (!%p941_p5), %s294_s25, 1024, %s296_s29, [#allocation6], %s1100_s26, %s1100_s26, %s1101_s27  }
  0x12   : > { %1087 = dma.done.wait (%p950_p2), [#allocation4], 1024  }
  0x13   : > { %1089 = vsyncadd (%p950_p2), [#allocation4], 4294966272 }
  0x14   : > { %1091 = dma.done.wait (%p950_p2), [#allocation6], 2048  }
  0x15   : > { %1093 = vsyncadd (%p950_p2), [#allocation6], 4294965248  ;;  %p372_p6 = scmp.lt.s32.totalorder %s1171_s12, 1  ;;  %v1103_v1 = vmov 0   ;;  %v1104_v2 = vmov 2   ;;  %v1105_v3 = vmov 4   ;;  %v381_v21 = vlaneseq }
  0x16   : > { %978 = vset.pattern.permute.xlu0 %v1103_v1  ;;  %980 = vset.pattern.permute.xlu1 %v1104_v2  ;;  %v911_v5 = vld [vmem:[#allocation3 + $0x38] sm:$0xff]  ;;  %v1106_v6 = vmov 1   ;;  %v1107_v7 = vmov 3   ;;  %v1108_v8 = vmov 5   ;;  %v1109_v9 = vmov 6   ;;  %v910_v11 = vld [vmem:[#allocation3 + $0x30] sm:$0xff] }
  0x17   : > { %s1245_s12 = smov (!%p372_p6, %s1171_s12), 1  ;;  %982 = vset.pattern.permute.xlu2 %v1105_v3  ;;  %508 = vmatpush.bf16.msra.mxu0 %v911_v5  ;;  %v1110_v10 = vmov 7   ;;  %v909_v12 = vld [vmem:[#allocation3 + $0x28] sm:$0xff]  ;;  %v908_v13 = vld [vmem:[#allocation3 + $0x20] sm:$0xff]  ;;  %v907_v14 = vld [vmem:[#allocation3 + $0x18] sm:$0xff]  ;;  %v382_v25 = vand.u32 127, %v381_v21 }
  0x18   : > { %s796_s30 = sshll.u32 %s1245_s12, 3  ;;  %v906_v15 = vld [vmem:[#allocation3 + $0x10] sm:$0xff]  ;;  %v905_v16 = vld [vmem:[#allocation3 + $0x8] sm:$0xff]  ;;  %v904_v17 = vld [vmem:[#allocation3] sm:$0xff]  ;;  %v1111_v31 = vmov 0.0   ;;  %vm699_vm8 = vcmask 7168  }
  0x19   : > { %s375_s13 = scalar_lea.vmem %s1233_s0, %s796_s30  ;;  %v919_v19 = vld [vmem:[#allocation5 + $0x38] sm:$0xff]  ;;  %v918_v20 = vld [vmem:[#allocation5 + $0x30] sm:$0xff]  ;;  %v917_v24 = vld [vmem:[#allocation5 + $0x28] sm:$0xff]  ;;  %s379_s24 = scalar_lea.vmem %s1242_s9, %s796_s30 }
  0x1a   : > { %v380_v4 = vld [vmem:[%s375_s13] sm:$0xff]  ;;  %590 = vmatpush.bf16.msra.mxu1 %v919_v19  ;;  %v914_v37 = vld [vmem:[#allocation5 + $0x10] sm:$0xff]  ;;  %v913_v44 = vld [vmem:[#allocation5 + $0x8] sm:$0xff] }
  0x1b   : > { %384 = vperm.xlu0 %978, %v380_v4   ;;  %398 = vperm.xlu1 %980, %v380_v4   ;;  %v916_v27 = vld [vmem:[#allocation5 + $0x20] sm:$0xff]  ;;  %v915_v30 = vld [vmem:[#allocation5 + $0x18] sm:$0xff]  ;;  %v926_v54 = vld [vmem:[#allocation7 + $0x30] sm:$0xff] }
  0x1c   : > { %412 = vperm.xlu2 %982, %v380_v4   ;;  %509 = vmatpush.bf16.msra.mxu0 %v910_v11  ;;  %v912_v52 = vld [vmem:[#allocation5] sm:$0xff]  ;;  %v927_v53 = vld [vmem:[#allocation7 + $0x38] sm:$0xff]  ;;  %v925_v55 = vld [vmem:[#allocation7 + $0x28] sm:$0xff] }
  0x1d   : > { %673 = vmatpush.bf16.msra.mxu2 %v927_v53  ;;  %v924_v56 = vld [vmem:[#allocation7 + $0x20] sm:$0xff]  ;;  %v923_v57 = vld [vmem:[#allocation7 + $0x18] sm:$0xff]  ;;  %v922_v58 = vld [vmem:[#allocation7 + $0x10] sm:$0xff] }
  0x1e   : > { %591 = vmatpush.bf16.msra.mxu1 %v918_v20  ;;  %v987_v59 = vld [vmem:[%s1235_s2] ss:$0 sm:$0xff]  ;;  %v921_v0 = vld [vmem:[#allocation7 + $0x8] sm:$0xff]  ;;  %v920_v1 = vld [vmem:[#allocation7] sm:$0xff] }
  0x1f   : > { %v988_v2 = vld [vmem:[%s1237_s4] ss:$0 sm:$0xff] }
  0x20   : > { %510 = vmatpush.bf16.msra.mxu0 %v909_v12  ;;  %v990_v11 = vld [vmem:[%s1240_s7] ss:$0 sm:$0xff] }
  0x21   : > { %674 = vmatpush.bf16.msra.mxu2 %v926_v54 }
  0x22   : > { %592 = vmatpush.bf16.msra.mxu1 %v917_v24 }
  0x23   : > { %979 = vset.pattern.permute.xlu0 %v1106_v6  ;;  %981 = vset.pattern.permute.xlu1 %v1107_v7 }
  0x24   : > { %391 = vperm.xlu0 %979, %v380_v4   ;;  %405 = vperm.xlu1 %981, %v380_v4  }
  0x25   : > { %983 = vset.pattern.permute.xlu2 %v1108_v8  ;;  %511 = vmatpush.bf16.msra.mxu0 %v908_v13  ;;  %v989_v8 = vld [vmem:[%s1239_s6] ss:$0 sm:$0xff] }
  0x26   : > { %419 = vperm.xlu2 %983, %v380_v4   ;;  %593 = vmatpush.bf16.msra.mxu1 %v916_v27 }
  0x27   : > { %675 = vmatpush.bf16.msra.mxu2 %v925_v55 }
  0x29   : > { %512 = vmatpush.bf16.msra.mxu0 %v907_v14 }
  0x2a   : > { %594 = vmatpush.bf16.msra.mxu1 %v915_v30 }
  0x2b   : > { %676 = vmatpush.bf16.msra.mxu2 %v924_v56 }
  0x2c   : > { %984 = vset.pattern.permute.xlu1 %v1109_v9  ;;  %986 = vset.pattern.permute.xlu0 %v1110_v10 }
  0x2d   : > { %426 = vperm.xlu1 %984, %v380_v4   ;;  %513 = vmatpush.bf16.msra.mxu0 %v906_v15  ;;  %v991_v15 = vld [vmem:[#allocation2] ss:$0 sm:$0xff] }
  0x2e   : > { %985 = vset.pattern.permute.xlu2 %v1110_v10  ;;  %595 = vmatpush.bf16.msra.mxu1 %v914_v37 }
  0x2f   : > { %433 = vperm.xlu2 %985, %v380_v4   ;;  %677 = vmatpush.bf16.msra.mxu2 %v923_v57 }
  0x31   : > { %514 = vmatpush.bf16.msra.mxu0 %v905_v16 }
  0x32   : > { %596 = vmatpush.bf16.msra.mxu1 %v913_v44 }
  0x33   : > { %678 = vmatpush.bf16.msra.mxu2 %v922_v58 }
  0x35   : > { %515 = vmatpush.bf16.msra.mxu0 %v904_v17 }
  0x36   : > { %597 = vmatpush.bf16.msra.mxu1 %v912_v52 }
  0x37   : > { %679 = vmatpush.bf16.msra.mxu2 %v921_v0 }
  0x3b   : > { %680 = vmatpush.bf16.msra.mxu2 %v920_v1 }
  0x76   : > { %v413_v18 = vpop.permute.xlu2 %412 }
  0x77   : > { %vm414_vm4 = vcmp.eq.s32.totalorder %v413_v18, %v382_v25 }
  0x78   : > { %v802_v41 = vsel %vm414_vm4, 1.0, %v1111_v31 }
  0x80   : > { %v420_v26 = vpop.permute.xlu2 %419 }
  0x81   : > { %vm421_vm5 = vcmp.eq.s32.totalorder %v420_v26, %v382_v25 }
  0x82   : > { %v803_v45 = vsel %vm421_vm5, 1.0, %v1111_v31 }
  0x89   : > { %v434_v39 = vpop.permute.xlu2 %433 }
  0x8a   : > { %vm435_vm6 = vcmp.eq.s32.totalorder %v434_v39, %v382_v25 }
  0x8b   : > { %v805_v48 = vsel %vm435_vm6, 1.0, %v1111_v31 }
  0x8d   : > { %v385_v22 = vpop.permute.xlu0 %384  ;;  %v399_v23 = vpop.permute.xlu1 %398 }
  0x8e   : > { %vm386_vm0 = vcmp.eq.s32.totalorder %v385_v22, %v382_v25  ;;  %vm400_vm1 = vcmp.eq.s32.totalorder %v399_v23, %v382_v25 }
  0x8f   : > { %v798_v32 = vsel %vm386_vm0, 1.0, %v1111_v31  ;;  %v800_v35 = vsel %vm400_vm1, 1.0, %v1111_v31 }
  0x96   : > { %v392_v28 = vpop.permute.xlu0 %391  ;;  %v406_v29 = vpop.permute.xlu1 %405 }
  0x97   : > { %vm393_vm2 = vcmp.eq.s32.totalorder %v392_v28, %v382_v25  ;;  %vm407_vm3 = vcmp.eq.s32.totalorder %v406_v29, %v382_v25 }
  0x98   : > { %v799_v33 = vsel %vm393_vm2, 1.0, %v1111_v31  ;;  %v801_v38 = vsel %vm407_vm3, 1.0, %v1111_v31 }
  0x99   : > { %v396_v34 = vadd.f32 %v799_v33, %v798_v32 }
  0x9b   : > { %v403_v36 = vadd.f32 %v800_v35, %v396_v34 }
  0x9d   : > { %v410_v40 = vadd.f32 %v801_v38, %v403_v36 }
  0x9f   : > { %v417_v42 = vadd.f32 %v802_v41, %v410_v40  ;;  %v427_v43 = vpop.permute.xlu1 %426 }
  0xa0   : > { %vm428_vm7 = vcmp.eq.s32.totalorder %v427_v43, %v382_v25 }
  0xa1   : > { %v424_v46 = vadd.f32 %v803_v45, %v417_v42  ;;  %v804_v47 = vsel %vm428_vm7, 1.0, %v1111_v31 }
  0xa3   : > { %v431_v49 = vadd.f32 %v804_v47, %v424_v46 }
  0xa5   : > { %v438_v50 = vadd.f32 %v805_v48, %v431_v49 }
  0xa7   : > { %v456_v51 = vpack.c.bf16 %v438_v50, %v438_v50 }
  0xa9   : > { %516 = vmatmul.bf16.vlgmr.msra.gmra.mxu0 %v456_v51 }
 0x126   : > { %v517_v60 = vpop.f32.mrf.mxu0 }
 0x127   : > { %v518_v61 = vadd.f32 %v987_v59, %v517_v60 }
 0x129   : > { %v538_v62 = vpack.c.bf16 %v518_v61, %v518_v61 }
 0x12b   : > { %598 = vmatmul.bf16.vlgmr.msra.gmra.mxu1 %v538_v62 }
 0x12e   : > { %v519_v63 = vpop.f32.mrf.mxu0 }
 0x1a8   : > { %v599_v3 = vpop.f32.mrf.mxu1 }
 0x1a9   : > { %v600_v4 = vadd.f32 %v988_v2, %v599_v3 }
 0x1ab   : > { %v603_v5 = vmax.f32 %v600_v4, 0.0 }
 0x1ad   : > { %v621_v6 = vpack.c.bf16 %v603_v5, %v603_v5 }
 0x1af   : > { %681 = vmatmul.bf16.vlgmr.msra.gmra.mxu2 %v621_v6 }
 0x1b0   : > { %v601_v7 = vpop.f32.mrf.mxu1 }
 0x232   : > { %v682_v9 = vpop.f32.mrf.mxu2 }
 0x233   : > { %v683_v10 = vadd.f32 %v989_v8, %v682_v9 }
 0x235   : > { %v686_v12 = vmax.f32 %v683_v10, 0.0 }
 0x237   : > { %v692_v13 = vmul.f32 %v990_v11, %v686_v12 }
 0x239   : > { %693 = vadd.xlane.f32.xlu0 %v692_v13 }
 0x23a   : > { %v684_v14 = vpop.f32.mrf.mxu2 }
 0x2ac   : > { %v694_v16 = vpop.xlane.xlu0 %693 }
 0x2ad   : > { %v698_v17 = vadd.f32 %v991_v15, %v694_v16 }
 0x2af   : > { %700 = vst.msk [vmem:[%s379_s24] sm:$0xff] %vm699_vm8, %v698_v17 }
 0x2b0 PF: > { %s23_s11 = sadd.s32 1, %s1096_s11  }
 0x2b1   : > { %p20_p7 = scmp.ge.s32.totalorder %s23_s11, 4  }
 0x2b3   :  { %22 = sbr.rel (!%p20_p7) target bundleno = 5 (0x5), region = 99 }
 0x2b8   :  { %720 = vsyncpa [#allocation4], 1 }
 0x2b9   :  { %722 = vsyncpa [#allocation4 + $0x1], 1 }
 0x2ba   :  { %723 = vsyncpa [#allocation6], 1 }

</bundles_post_ra>
